<compile_context>
chip_gen: v6e
topology: v6e:2x2x1
jax: 0.10.0
libtpu: 0.0.40
codegen_flags: <defaults>
</compile_context>

<pallas_src>
import functools

import jax
import jax.numpy as jnp
from jax import lax
from jax.experimental import pallas as pl
from jax.experimental.pallas import tpu as pltpu


# 3x3 taps in (dy, dx) order; matches the (ky, kx) ordering used when the conv
# weights are flattened to (Cout, 9*Cin) in the wrapper.
_TAPS = tuple((dy, dx) for dy in (-1, 0, 1) for dx in (-1, 0, 1))


def _basic_block_kernel(x_ref, ypos_ref, xpos_ref, w1_ref, b1_ref,
                        w2_ref, b2_ref, out_ref, *, H, W):
    # x_ref   : (1, Cin,  H*W)  input image (channels on sublanes, pixels on lanes)
    # ypos_ref: (1, H*W) int32  row index of each flattened pixel
    # xpos_ref: (1, H*W) int32  column index of each flattened pixel
    # w1_ref  : (Cmid, 9*Cin)   conv1 weights, BN1 scale folded in, im2col order
    # b1_ref  : (Cmid, 1)       BN1 bias
    # w2_ref  : (Cout, 9*Cmid)  conv2 weights, BN2 scale folded in
    # b2_ref  : (Cout, 1)       BN2 bias
    # out_ref : (1, Cout, H*W)
    HW = H * W
    x = x_ref[0].astype(jnp.float32)                       # (Cin, HW)

    y_pos = ypos_ref[...]                                  # (1, HW) int32
    x_pos = xpos_ref[...]                                  # (1, HW) int32

    # Border-validity mask per tap (None == every pixel valid).  Computed once
    # and reused by both convolutions; only cheap VPU comparisons in-kernel.
    masks = []
    for dy, dx in _TAPS:
        conds = []
        if dy == -1:
            conds.append(y_pos >= 1)
        elif dy == 1:
            conds.append(y_pos <= H - 2)
        if dx == -1:
            conds.append(x_pos >= 1)
        elif dx == 1:
            conds.append(x_pos <= W - 2)
        mask = None
        for c in conds:
            mask = c if mask is None else jnp.logical_and(mask, c)
        masks.append(mask)

    def conv3x3(inp, w_ref):
        # inp: (C, HW) f32 resident slab; w_ref: (Cout, 9*C).
        # Shifted tap views via lane rotation + zero-mask of invalid borders,
        # then a single MXU matmul with K = 9*C.
        cols = []
        for t, (dy, dx) in enumerate(_TAPS):
            shift = dy * W + dx                            # source-pixel offset
            col = inp if shift == 0 else pltpu.roll(inp, (-shift) % HW, axis=1)
            if masks[t] is not None:
                col = jnp.where(masks[t], col, 0.0)
            cols.append(col)
        im2col = jnp.concatenate(cols, axis=0)             # (9*C, HW)
        return jnp.dot(w_ref[...], im2col,
                       preferred_element_type=jnp.float32)  # (Cout, HW)

    # conv1 -> BN1 (scale already folded into w1) -> ReLU
    y1 = jnp.maximum(conv3x3(x, w1_ref) + b1_ref[...], 0.0)   # (Cmid, HW)
    # conv2 -> BN2
    y2 = conv3x3(y1, w2_ref) + b2_ref[...]                    # (Cout, HW)
    # identity residual (stride=1, downsample=None, Cin == Cout) + final ReLU
    out_ref[0] = jnp.maximum(y2 + x, 0.0).astype(out_ref.dtype)


def basic_block_pallas(x_nchw, params, eps=1e-5):
    """x_nchw: (N, C, H, W) float32 -> (N, C, H, W) float32."""
    N, Cin, H, W = x_nchw.shape
    HW = H * W

    w1, w2 = params["w1"], params["w2"]                    # OIHW
    Cmid, Cout = w1.shape[0], w2.shape[0]
    if Cin != Cout:
        # TODO(synk): stride>1 / projection-downsample BasicBlocks need a 1x1
        # conv residual path; this kernel covers the default (stride=1,
        # downsample=None) configuration only.
        raise ValueError("identity residual requires Cin == Cout")

    # Fold inference-mode BatchNorm into per-channel scale/bias; fold the
    # scale directly into the conv weights so the kernel epilogue is bias-only.
    s1 = params["bn1_gamma"] / jnp.sqrt(params["bn1_var"] + eps)
    b1 = params["bn1_beta"] - params["bn1_mean"] * s1
    s2 = params["bn2_gamma"] / jnp.sqrt(params["bn2_var"] + eps)
    b2 = params["bn2_beta"] - params["bn2_mean"] * s2

    # OIHW -> (Cout, ky, kx, Cin) -> (Cout, 9*Cin), im2col column order.
    w1_r = (jnp.transpose(w1, (0, 2, 3, 1)).reshape(Cmid, 9 * Cin)
            * s1[:, None]).astype(jnp.float32)
    w2_r = (jnp.transpose(w2, (0, 2, 3, 1)).reshape(Cout, 9 * Cmid)
            * s2[:, None]).astype(jnp.float32)
    b1_c = b1.reshape(Cmid, 1).astype(jnp.float32)
    b2_c = b2.reshape(Cout, 1).astype(jnp.float32)
    # TODO(synk): for real channel counts (>=64) cast activations/weights to
    # bf16 (keeping f32 accumulation + f32 epilogue) for the bf16-native MXU.

    # Flattened pixel coordinates, precomputed once (avoids in-kernel int
    # div/mod); tiny constant inputs.
    pix = jnp.arange(HW, dtype=jnp.int32)
    ypos = (pix // W).reshape(1, HW)
    xpos = (pix % W).reshape(1, HW)

    # (N, C, H, W) -> (N, C, H*W): pure bitcast, no data movement.
    x_flat = x_nchw.reshape(N, Cin, HW)

    kernel = functools.partial(_basic_block_kernel, H=H, W=W)

    # TODO(synk): for real ResNet stage sizes (e.g. 56x56x64+) add an H-row
    # grid axis with a 1-row halo so per-step VMEM stays bounded on v7x
    # (64 MiB) / v5e (16 MiB default scoped) and both v7x TensorCores get work
    # even at batch 1; at these test sizes a whole image is a few hundred KB.
    out_flat = pl.pallas_call(
        kernel,
        out_shape=jax.ShapeDtypeStruct((N, Cout, HW), x_nchw.dtype),
        grid_spec=pltpu.PrefetchScalarGridSpec(
            num_scalar_prefetch=0,
            grid=(N,),
            in_specs=[
                pl.BlockSpec((1, Cin, HW), lambda n: (n, 0, 0)),
                pl.BlockSpec((1, HW), lambda n: (0, 0)),
                pl.BlockSpec((1, HW), lambda n: (0, 0)),
                pl.BlockSpec((Cmid, 9 * Cin), lambda n: (0, 0)),
                pl.BlockSpec((Cmid, 1), lambda n: (0, 0)),
                pl.BlockSpec((Cout, 9 * Cmid), lambda n: (0, 0)),
                pl.BlockSpec((Cout, 1), lambda n: (0, 0)),
            ],
            out_specs=pl.BlockSpec((1, Cout, HW), lambda n: (n, 0, 0)),
        ),
        compiler_params=pltpu.CompilerParams(
            dimension_semantics=("parallel",)),
    )(x_flat, ypos, xpos, w1_r, b1_c, w2_r, b2_c)

    return out_flat.reshape(N, Cout, H, W)


# ----------------------- pure-JAX reference (NCHW) ---------------------------
def basic_block_ref(x, params, eps=1e-5):
    def conv(h, w):
        return lax.conv_general_dilated(
            h, w, window_strides=(1, 1), padding=((1, 1), (1, 1)),
            dimension_numbers=("NCHW", "OIHW", "NCHW"))

    def bn(h, g, b, m, v):
        c = lambda a: a[None, :, None, None]
        return (h - c(m)) / jnp.sqrt(c(v) + eps) * c(g) + c(b)

    out = jax.nn.relu(bn(conv(x, params["w1"]), params["bn1_gamma"],
                         params["bn1_beta"], params["bn1_mean"],
                         params["bn1_var"]))
    out = bn(conv(out, params["w2"]), params["bn2_gamma"],
             params["bn2_beta"], params["bn2_mean"], params["bn2_var"])
    return jax.nn.relu(out + x)


def make_params(key, inplanes, planes):
    ks = jax.random.split(key, 10)
    return {
        "w1": 0.1 * jax.random.normal(ks[0], (planes, inplanes, 3, 3), jnp.float32),
        "w2": 0.1 * jax.random.normal(ks[1], (planes, planes, 3, 3), jnp.float32),
        "bn1_gamma": jax.random.uniform(ks[2], (planes,), jnp.float32, 0.5, 1.5),
        "bn1_beta": 0.1 * jax.random.normal(ks[3], (planes,), jnp.float32),
        "bn1_mean": 0.1 * jax.random.normal(ks[4], (planes,), jnp.float32),
        "bn1_var": jax.random.uniform(ks[5], (planes,), jnp.float32, 0.5, 1.5),
        "bn2_gamma": jax.random.uniform(ks[6], (planes,), jnp.float32, 0.5, 1.5),
        "bn2_beta": 0.1 * jax.random.normal(ks[7], (planes,), jnp.float32),
        "bn2_mean": 0.1 * jax.random.normal(ks[8], (planes,), jnp.float32),
        "bn2_var": jax.random.uniform(ks[9], (planes,), jnp.float32, 0.5, 1.5),
    }


if __name__ == "__main__":
    key = jax.random.PRNGKey(0)
    kx, kp = jax.random.split(key)

    N, C, H, W = 2, 8, 16, 16          # inplanes == planes, stride=1, no downsample
    x = jax.random.normal(kx, (N, C, H, W), jnp.float32)
    params = make_params(kp, C, C)

    out = basic_block_pallas(x, params)
    out = jax.block_until_ready(out)

    ref = basic_block_ref(x, params)
    assert out.shape == ref.shape
    assert jnp.allclose(out, ref, atol=1e-4, rtol=1e-4), (
        float(jnp.max(jnp.abs(out - ref))))

    print("KERNEL_OK")
</pallas_src>

<mosaic_0001>
module attributes {stable_mosaic.version = 11 : i64} {
  func.func @_basic_block_kernel(%arg0: i32, %arg1: memref<1x8x256xf32, #tpu.memory_space<vmem>>, %arg2: memref<1x256xi32, #tpu.memory_space<vmem>>, %arg3: memref<1x256xi32, #tpu.memory_space<vmem>>, %arg4: memref<8x72xf32, #tpu.memory_space<vmem>>, %arg5: memref<8x1xf32, #tpu.memory_space<vmem>>, %arg6: memref<8x72xf32, #tpu.memory_space<vmem>>, %arg7: memref<8x1xf32, #tpu.memory_space<vmem>>, %arg8: memref<1x8x256xf32, #tpu.memory_space<vmem>>) attributes {dimension_semantics = [#tpu.dimension_semantics<parallel>], iteration_bounds = array<i64: 2>, scalar_prefetch = 0 : i64, scratch_operands = 0 : i64, tpu.core_type = #tpu.core_type<tc>, window_params = [{transform_indices = @transform_0, window_bounds = array<i64: 1, 8, 256>}, {pipeline_mode = #tpu.pipeline_mode<synchronous>, transform_indices = @transform_1, window_bounds = array<i64: 1, 256>}, {pipeline_mode = #tpu.pipeline_mode<synchronous>, transform_indices = @transform_2, window_bounds = array<i64: 1, 256>}, {pipeline_mode = #tpu.pipeline_mode<synchronous>, transform_indices = @transform_3, window_bounds = array<i64: 8, 72>}, {pipeline_mode = #tpu.pipeline_mode<synchronous>, transform_indices = @transform_4, window_bounds = array<i64: 8, 1>}, {pipeline_mode = #tpu.pipeline_mode<synchronous>, transform_indices = @transform_5, window_bounds = array<i64: 8, 72>}, {pipeline_mode = #tpu.pipeline_mode<synchronous>, transform_indices = @transform_6, window_bounds = array<i64: 8, 1>}, {transform_indices = @transform_7, window_bounds = array<i64: 1, 8, 256>}]} {
    %c0 = arith.constant 0 : index
    %c0_0 = arith.constant 0 : index
    %c0_1 = arith.constant 0 : index
    %0 = vector.load %arg1[%c0, %c0_0, %c0_1] : memref<1x8x256xf32, #tpu.memory_space<vmem>>, vector<1x8x256xf32>
    %1 = vector.shape_cast %0 : vector<1x8x256xf32> to vector<8x256xf32>
    %c0_2 = arith.constant 0 : index
    %c0_3 = arith.constant 0 : index
    %2 = vector.load %arg2[%c0_2, %c0_3] : memref<1x256xi32, #tpu.memory_space<vmem>>, vector<1x256xi32>
    %c0_4 = arith.constant 0 : index
    %c0_5 = arith.constant 0 : index
    %3 = vector.load %arg3[%c0_4, %c0_5] : memref<1x256xi32, #tpu.memory_space<vmem>>, vector<1x256xi32>
    %c1_i32 = arith.constant 1 : i32
    %4 = vector.broadcast %c1_i32 : i32 to vector<1x256xi32>
    %5 = arith.cmpi sge, %2, %4 : vector<1x256xi32>
    %c1_i32_6 = arith.constant 1 : i32
    %6 = vector.broadcast %c1_i32_6 : i32 to vector<1x256xi32>
    %7 = arith.cmpi sge, %3, %6 : vector<1x256xi32>
    %8 = arith.andi %5, %7 : vector<1x256xi1>
    %c1_i32_7 = arith.constant 1 : i32
    %9 = vector.broadcast %c1_i32_7 : i32 to vector<1x256xi32>
    %10 = arith.cmpi sge, %2, %9 : vector<1x256xi32>
    %c1_i32_8 = arith.constant 1 : i32
    %11 = vector.broadcast %c1_i32_8 : i32 to vector<1x256xi32>
    %12 = arith.cmpi sge, %2, %11 : vector<1x256xi32>
    %c14_i32 = arith.constant 14 : i32
    %13 = vector.broadcast %c14_i32 : i32 to vector<1x256xi32>
    %14 = arith.cmpi sle, %3, %13 : vector<1x256xi32>
    %15 = arith.andi %12, %14 : vector<1x256xi1>
    %c1_i32_9 = arith.constant 1 : i32
    %16 = vector.broadcast %c1_i32_9 : i32 to vector<1x256xi32>
    %17 = arith.cmpi sge, %3, %16 : vector<1x256xi32>
    %c14_i32_10 = arith.constant 14 : i32
    %18 = vector.broadcast %c14_i32_10 : i32 to vector<1x256xi32>
    %19 = arith.cmpi sle, %3, %18 : vector<1x256xi32>
    %c14_i32_11 = arith.constant 14 : i32
    %20 = vector.broadcast %c14_i32_11 : i32 to vector<1x256xi32>
    %21 = arith.cmpi sle, %2, %20 : vector<1x256xi32>
    %c1_i32_12 = arith.constant 1 : i32
    %22 = vector.broadcast %c1_i32_12 : i32 to vector<1x256xi32>
    %23 = arith.cmpi sge, %3, %22 : vector<1x256xi32>
    %24 = arith.andi %21, %23 : vector<1x256xi1>
    %c14_i32_13 = arith.constant 14 : i32
    %25 = vector.broadcast %c14_i32_13 : i32 to vector<1x256xi32>
    %26 = arith.cmpi sle, %2, %25 : vector<1x256xi32>
    %c14_i32_14 = arith.constant 14 : i32
    %27 = vector.broadcast %c14_i32_14 : i32 to vector<1x256xi32>
    %28 = arith.cmpi sle, %2, %27 : vector<1x256xi32>
    %c14_i32_15 = arith.constant 14 : i32
    %29 = vector.broadcast %c14_i32_15 : i32 to vector<1x256xi32>
    %30 = arith.cmpi sle, %3, %29 : vector<1x256xi32>
    %31 = arith.andi %28, %30 : vector<1x256xi1>
    %c17_i32 = arith.constant 17 : i32
    %32 = tpu.dynamic_rotate %1 by %c17_i32 dim 1 : vector<8x256xf32>, i32 -> vector<8x256xf32>
    %cst = arith.constant 0.000000e+00 : f32
    %33 = vector.shape_cast %8 : vector<1x256xi1> to vector<1x256xi1>
    %34 = vector.broadcast %33 : vector<1x256xi1> to vector<8x256xi1>
    %35 = vector.broadcast %cst : f32 to vector<8x256xf32>
    %36 = arith.select %34, %32, %35 : vector<8x256xi1>, vector<8x256xf32>
    %c16_i32 = arith.constant 16 : i32
    %37 = tpu.dynamic_rotate %1 by %c16_i32 dim 1 : vector<8x256xf32>, i32 -> vector<8x256xf32>
    %cst_16 = arith.constant 0.000000e+00 : f32
    %38 = vector.shape_cast %10 : vector<1x256xi1> to vector<1x256xi1>
    %39 = vector.broadcast %38 : vector<1x256xi1> to vector<8x256xi1>
    %40 = vector.broadcast %cst_16 : f32 to vector<8x256xf32>
    %41 = arith.select %39, %37, %40 : vector<8x256xi1>, vector<8x256xf32>
    %c15_i32 = arith.constant 15 : i32
    %42 = tpu.dynamic_rotate %1 by %c15_i32 dim 1 : vector<8x256xf32>, i32 -> vector<8x256xf32>
    %cst_17 = arith.constant 0.000000e+00 : f32
    %43 = vector.shape_cast %15 : vector<1x256xi1> to vector<1x256xi1>
    %44 = vector.broadcast %43 : vector<1x256xi1> to vector<8x256xi1>
    %45 = vector.broadcast %cst_17 : f32 to vector<8x256xf32>
    %46 = arith.select %44, %42, %45 : vector<8x256xi1>, vector<8x256xf32>
    %c1_i32_18 = arith.constant 1 : i32
    %47 = tpu.dynamic_rotate %1 by %c1_i32_18 dim 1 : vector<8x256xf32>, i32 -> vector<8x256xf32>
    %cst_19 = arith.constant 0.000000e+00 : f32
    %48 = vector.shape_cast %17 : vector<1x256xi1> to vector<1x256xi1>
    %49 = vector.broadcast %48 : vector<1x256xi1> to vector<8x256xi1>
    %50 = vector.broadcast %cst_19 : f32 to vector<8x256xf32>
    %51 = arith.select %49, %47, %50 : vector<8x256xi1>, vector<8x256xf32>
    %c255_i32 = arith.constant 255 : i32
    %52 = tpu.dynamic_rotate %1 by %c255_i32 dim 1 : vector<8x256xf32>, i32 -> vector<8x256xf32>
    %cst_20 = arith.constant 0.000000e+00 : f32
    %53 = vector.shape_cast %19 : vector<1x256xi1> to vector<1x256xi1>
    %54 = vector.broadcast %53 : vector<1x256xi1> to vector<8x256xi1>
    %55 = vector.broadcast %cst_20 : f32 to vector<8x256xf32>
    %56 = arith.select %54, %52, %55 : vector<8x256xi1>, vector<8x256xf32>
    %c241_i32 = arith.constant 241 : i32
    %57 = tpu.dynamic_rotate %1 by %c241_i32 dim 1 : vector<8x256xf32>, i32 -> vector<8x256xf32>
    %cst_21 = arith.constant 0.000000e+00 : f32
    %58 = vector.shape_cast %24 : vector<1x256xi1> to vector<1x256xi1>
    %59 = vector.broadcast %58 : vector<1x256xi1> to vector<8x256xi1>
    %60 = vector.broadcast %cst_21 : f32 to vector<8x256xf32>
    %61 = arith.select %59, %57, %60 : vector<8x256xi1>, vector<8x256xf32>
    %c240_i32 = arith.constant 240 : i32
    %62 = tpu.dynamic_rotate %1 by %c240_i32 dim 1 : vector<8x256xf32>, i32 -> vector<8x256xf32>
    %cst_22 = arith.constant 0.000000e+00 : f32
    %63 = vector.shape_cast %26 : vector<1x256xi1> to vector<1x256xi1>
    %64 = vector.broadcast %63 : vector<1x256xi1> to vector<8x256xi1>
    %65 = vector.broadcast %cst_22 : f32 to vector<8x256xf32>
    %66 = arith.select %64, %62, %65 : vector<8x256xi1>, vector<8x256xf32>
    %c239_i32 = arith.constant 239 : i32
    %67 = tpu.dynamic_rotate %1 by %c239_i32 dim 1 : vector<8x256xf32>, i32 -> vector<8x256xf32>
    %cst_23 = arith.constant 0.000000e+00 : f32
    %68 = vector.shape_cast %31 : vector<1x256xi1> to vector<1x256xi1>
    %69 = vector.broadcast %68 : vector<1x256xi1> to vector<8x256xi1>
    %70 = vector.broadcast %cst_23 : f32 to vector<8x256xf32>
    %71 = arith.select %69, %67, %70 : vector<8x256xi1>, vector<8x256xf32>
    %72 = tpu.concatenate %36, %41, %46, %51, %1, %56, %61, %66, %71 in 0 : vector<8x256xf32>, vector<8x256xf32>, vector<8x256xf32>, vector<8x256xf32>, vector<8x256xf32>, vector<8x256xf32>, vector<8x256xf32>, vector<8x256xf32>, vector<8x256xf32> -> vector<72x256xf32>
    %c0_24 = arith.constant 0 : index
    %c0_25 = arith.constant 0 : index
    %73 = vector.load %arg4[%c0_24, %c0_25] : memref<8x72xf32, #tpu.memory_space<vmem>>, vector<8x72xf32>
    %cst_26 = arith.constant dense<0.000000e+00> : vector<8x256xf32>
    %74 = tpu.matmul %73, %72, %cst_26 {dimension_numbers = #tpu.dot_dimension_numbers<[1], [0], [0], [1], [0, 0, 1, 1], [], []>} : vector<8x72xf32>, vector<72x256xf32>, vector<8x256xf32> -> vector<8x256xf32>
    %c0_27 = arith.constant 0 : index
    %c0_28 = arith.constant 0 : index
    %75 = vector.load %arg5[%c0_27, %c0_28] : memref<8x1xf32, #tpu.memory_space<vmem>>, vector<8x1xf32>
    %76 = vector.broadcast %75 : vector<8x1xf32> to vector<8x256xf32>
    %77 = arith.addf %74, %76 : vector<8x256xf32>
    %cst_29 = arith.constant 0.000000e+00 : f32
    %78 = vector.broadcast %cst_29 : f32 to vector<8x256xf32>
    %79 = arith.maximumf %77, %78 : vector<8x256xf32>
    %c17_i32_30 = arith.constant 17 : i32
    %80 = tpu.dynamic_rotate %79 by %c17_i32_30 dim 1 : vector<8x256xf32>, i32 -> vector<8x256xf32>
    %cst_31 = arith.constant 0.000000e+00 : f32
    %81 = vector.shape_cast %8 : vector<1x256xi1> to vector<1x256xi1>
    %82 = vector.broadcast %81 : vector<1x256xi1> to vector<8x256xi1>
    %83 = vector.broadcast %cst_31 : f32 to vector<8x256xf32>
    %84 = arith.select %82, %80, %83 : vector<8x256xi1>, vector<8x256xf32>
    %c16_i32_32 = arith.constant 16 : i32
    %85 = tpu.dynamic_rotate %79 by %c16_i32_32 dim 1 : vector<8x256xf32>, i32 -> vector<8x256xf32>
    %cst_33 = arith.constant 0.000000e+00 : f32
    %86 = vector.shape_cast %10 : vector<1x256xi1> to vector<1x256xi1>
    %87 = vector.broadcast %86 : vector<1x256xi1> to vector<8x256xi1>
    %88 = vector.broadcast %cst_33 : f32 to vector<8x256xf32>
    %89 = arith.select %87, %85, %88 : vector<8x256xi1>, vector<8x256xf32>
    %c15_i32_34 = arith.constant 15 : i32
    %90 = tpu.dynamic_rotate %79 by %c15_i32_34 dim 1 : vector<8x256xf32>, i32 -> vector<8x256xf32>
    %cst_35 = arith.constant 0.000000e+00 : f32
    %91 = vector.shape_cast %15 : vector<1x256xi1> to vector<1x256xi1>
    %92 = vector.broadcast %91 : vector<1x256xi1> to vector<8x256xi1>
    %93 = vector.broadcast %cst_35 : f32 to vector<8x256xf32>
    %94 = arith.select %92, %90, %93 : vector<8x256xi1>, vector<8x256xf32>
    %c1_i32_36 = arith.constant 1 : i32
    %95 = tpu.dynamic_rotate %79 by %c1_i32_36 dim 1 : vector<8x256xf32>, i32 -> vector<8x256xf32>
    %cst_37 = arith.constant 0.000000e+00 : f32
    %96 = vector.shape_cast %17 : vector<1x256xi1> to vector<1x256xi1>
    %97 = vector.broadcast %96 : vector<1x256xi1> to vector<8x256xi1>
    %98 = vector.broadcast %cst_37 : f32 to vector<8x256xf32>
    %99 = arith.select %97, %95, %98 : vector<8x256xi1>, vector<8x256xf32>
    %c255_i32_38 = arith.constant 255 : i32
    %100 = tpu.dynamic_rotate %79 by %c255_i32_38 dim 1 : vector<8x256xf32>, i32 -> vector<8x256xf32>
    %cst_39 = arith.constant 0.000000e+00 : f32
    %101 = vector.shape_cast %19 : vector<1x256xi1> to vector<1x256xi1>
    %102 = vector.broadcast %101 : vector<1x256xi1> to vector<8x256xi1>
    %103 = vector.broadcast %cst_39 : f32 to vector<8x256xf32>
    %104 = arith.select %102, %100, %103 : vector<8x256xi1>, vector<8x256xf32>
    %c241_i32_40 = arith.constant 241 : i32
    %105 = tpu.dynamic_rotate %79 by %c241_i32_40 dim 1 : vector<8x256xf32>, i32 -> vector<8x256xf32>
    %cst_41 = arith.constant 0.000000e+00 : f32
    %106 = vector.shape_cast %24 : vector<1x256xi1> to vector<1x256xi1>
    %107 = vector.broadcast %106 : vector<1x256xi1> to vector<8x256xi1>
    %108 = vector.broadcast %cst_41 : f32 to vector<8x256xf32>
    %109 = arith.select %107, %105, %108 : vector<8x256xi1>, vector<8x256xf32>
    %c240_i32_42 = arith.constant 240 : i32
    %110 = tpu.dynamic_rotate %79 by %c240_i32_42 dim 1 : vector<8x256xf32>, i32 -> vector<8x256xf32>
    %cst_43 = arith.constant 0.000000e+00 : f32
    %111 = vector.shape_cast %26 : vector<1x256xi1> to vector<1x256xi1>
    %112 = vector.broadcast %111 : vector<1x256xi1> to vector<8x256xi1>
    %113 = vector.broadcast %cst_43 : f32 to vector<8x256xf32>
    %114 = arith.select %112, %110, %113 : vector<8x256xi1>, vector<8x256xf32>
    %c239_i32_44 = arith.constant 239 : i32
    %115 = tpu.dynamic_rotate %79 by %c239_i32_44 dim 1 : vector<8x256xf32>, i32 -> vector<8x256xf32>
    %cst_45 = arith.constant 0.000000e+00 : f32
    %116 = vector.shape_cast %31 : vector<1x256xi1> to vector<1x256xi1>
    %117 = vector.broadcast %116 : vector<1x256xi1> to vector<8x256xi1>
    %118 = vector.broadcast %cst_45 : f32 to vector<8x256xf32>
    %119 = arith.select %117, %115, %118 : vector<8x256xi1>, vector<8x256xf32>
    %120 = tpu.concatenate %84, %89, %94, %99, %79, %104, %109, %114, %119 in 0 : vector<8x256xf32>, vector<8x256xf32>, vector<8x256xf32>, vector<8x256xf32>, vector<8x256xf32>, vector<8x256xf32>, vector<8x256xf32>, vector<8x256xf32>, vector<8x256xf32> -> vector<72x256xf32>
    %c0_46 = arith.constant 0 : index
    %c0_47 = arith.constant 0 : index
    %121 = vector.load %arg6[%c0_46, %c0_47] : memref<8x72xf32, #tpu.memory_space<vmem>>, vector<8x72xf32>
    %cst_48 = arith.constant dense<0.000000e+00> : vector<8x256xf32>
    %122 = tpu.matmul %121, %120, %cst_48 {dimension_numbers = #tpu.dot_dimension_numbers<[1], [0], [0], [1], [0, 0, 1, 1], [], []>} : vector<8x72xf32>, vector<72x256xf32>, vector<8x256xf32> -> vector<8x256xf32>
    %c0_49 = arith.constant 0 : index
    %c0_50 = arith.constant 0 : index
    %123 = vector.load %arg7[%c0_49, %c0_50] : memref<8x1xf32, #tpu.memory_space<vmem>>, vector<8x1xf32>
    %124 = vector.broadcast %123 : vector<8x1xf32> to vector<8x256xf32>
    %125 = arith.addf %122, %124 : vector<8x256xf32>
    %126 = arith.addf %125, %1 : vector<8x256xf32>
    %cst_51 = arith.constant 0.000000e+00 : f32
    %127 = vector.broadcast %cst_51 : f32 to vector<8x256xf32>
    %128 = arith.maximumf %126, %127 : vector<8x256xf32>
    %c0_52 = arith.constant 0 : index
    %c0_53 = arith.constant 0 : index
    %c0_54 = arith.constant 0 : index
    %129 = vector.load %arg8[%c0_52, %c0_53, %c0_54] : memref<1x8x256xf32, #tpu.memory_space<vmem>>, vector<1x8x256xf32>
    %130 = vector.shape_cast %129 : vector<1x8x256xf32> to vector<8x256xf32>
    %131 = vector.shape_cast %128 : vector<8x256xf32> to vector<1x8x256xf32>
    tpu.vector_store %arg8[%c0_52, %c0_53, %c0_54], %131 {strides = array<i32>} : memref<1x8x256xf32, #tpu.memory_space<vmem>>, vector<1x8x256xf32>,
    return
  }
  func.func @transform_0(%arg0: i32) -> (i32, i32, i32) {
    %c0_i32 = arith.constant 0 : i32
    %c0_i32_0 = arith.constant 0 : i32
    %c0_i32_1 = arith.constant 0 : i32
    return %arg0, %c0_i32, %c0_i32_0 : i32, i32, i32
  }
  func.func @transform_1(%arg0: i32) -> (i32, i32) {
    %c0_i32 = arith.constant 0 : i32
    %c0_i32_0 = arith.constant 0 : i32
    %c0_i32_1 = arith.constant 0 : i32
    return %c0_i32, %c0_i32_0 : i32, i32
  }
  func.func @transform_2(%arg0: i32) -> (i32, i32) {
    %c0_i32 = arith.constant 0 : i32
    %c0_i32_0 = arith.constant 0 : i32
    %c0_i32_1 = arith.constant 0 : i32
    return %c0_i32, %c0_i32_0 : i32, i32
  }
  func.func @transform_3(%arg0: i32) -> (i32, i32) {
    %c0_i32 = arith.constant 0 : i32
    %c0_i32_0 = arith.constant 0 : i32
    %c0_i32_1 = arith.constant 0 : i32
    return %c0_i32, %c0_i32_0 : i32, i32
  }
  func.func @transform_4(%arg0: i32) -> (i32, i32) {
    %c0_i32 = arith.constant 0 : i32
    %c0_i32_0 = arith.constant 0 : i32
    %c0_i32_1 = arith.constant 0 : i32
    return %c0_i32, %c0_i32_0 : i32, i32
  }
  func.func @transform_5(%arg0: i32) -> (i32, i32) {
    %c0_i32 = arith.constant 0 : i32
    %c0_i32_0 = arith.constant 0 : i32
    %c0_i32_1 = arith.constant 0 : i32
    return %c0_i32, %c0_i32_0 : i32, i32
  }
  func.func @transform_6(%arg0: i32) -> (i32, i32) {
    %c0_i32 = arith.constant 0 : i32
    %c0_i32_0 = arith.constant 0 : i32
    %c0_i32_1 = arith.constant 0 : i32
    return %c0_i32, %c0_i32_0 : i32, i32
  }
  func.func @transform_7(%arg0: i32) -> (i32, i32, i32) {
    %c0_i32 = arith.constant 0 : i32
    %c0_i32_0 = arith.constant 0 : i32
    %c0_i32_1 = arith.constant 0 : i32
    return %arg0, %c0_i32, %c0_i32_0 : i32, i32, i32
  }
}

</mosaic_0001>

<bundles_post_ra>
// kernel: tpu_custom_call.1
= control target key start
LH: loop header
LB: loop body
LE: loop exit
PB: predicated region body
PF: predicated region fallthrough
CT: control target
= control target key end

     0   :  { %12 = vsyncpa [#allocation3], 0  ;;  %s1520_s0 = inlined_call_operand.hbm [shape: f32[2,8,256], index: 0, kind: input, shape index: {}]   ;;  %s1521_s1 = inlined_call_operand.vmem [shape: s32[1,256], index: 1, kind: input, shape index: {}]   ;;  %s1522_s2 = inlined_call_operand.vmem [shape: s32[1,256], index: 2, kind: input, shape index: {}]   ;;  %s1523_s3 = inlined_call_operand.vmem [shape: f32[8,72], index: 3, kind: input, shape index: {}]   ;;  %s1524_s4 = inlined_call_operand.vmem [shape: f32[8,1], index: 4, kind: input, shape index: {}]   ;;  %s1525_s5 = inlined_call_operand.vmem [shape: f32[8,72], index: 5, kind: input, shape index: {}]   ;;  %s1526_s6 = inlined_call_operand.vmem [shape: f32[8,1], index: 6, kind: input, shape index: {}]   ;;  %s1527_s7 = inlined_call_operand.hbm [shape: f32[2,8,256], index: 7, kind: output, shape index: {}]  }
   0x1   :  { %14 = vsyncpa [#allocation3 + $0x1], 0 }
   0x2   :  { %15 = vsyncpa [#allocation4], 0 }
   0x3   :  { %17 = vsyncpa [#allocation4 + $0x1], 0  ;;  %s1042_s24 = smov 0   ;;  %s1044_s25 = smov 0  }
   0x4   :  { %s1046_s26 = smov 0   ;;  %s1048_s27 = smov 0  }
   0x5 LB: > { %s1063_s28 = sadd.s32 4294967295, %s988_s27   ;;  %s789_s29 = sadd.s32 4294967294, %s988_s27   ;;  %s988_s27 = sphi %s1048_s27, %s1615_s27   ;;  %s984_s26 = sphi %s1046_s26, %s1614_s26   ;;  %s980_s25 = sphi %s1044_s25, %s1613_s25   ;;  %s976_s24 = sphi %s1042_s24, %s1612_s24  }
   0x6   : > { %s1067_s30 = sadd.s32 1, %s988_s27   ;;  %s30_s8 = sadd.s32 1, %s984_s26 }
   0x7   : > { %s27_s9 = ssub.s32 %s988_s27, %s1067_s30  ;;  %p37_p0 = scmp.ne.s32.totalorder %s984_s26, %s980_s25 }
   0x8   : > { %p28_p1 = scmp.eq.s32.totalorder %s27_s9, 0  ;;  %p38_p2 = scmp.eq.s32.totalorder %s988_s27, 0 }
   0x9   : > { %p43_p3 = scmp.ne.s32.totalorder %s980_s25, %s976_s24  ;;  %p44_p4 = scmp.eq.s32.totalorder %s1063_s28, 0 }
   0xa   : > { %s1079_s10 = scalar_select %p28_p1, %s984_s26, %s30_s8  }
   0xb   : > { %p1081_p5 = por %p38_p2, %p37_p0  ;;  %p1085_p6 = por %p44_p4, %p43_p3 }
   0xc   : > { %p193_p7 = scmp.eq.s32.totalorder %s1063_s28, 1  ;;  %p199_p8 = scmp.eq.s32.totalorder %s789_s29, 1 }
   0xd   : > { %s1547_s12 = scalar_select %p1085_p6, 1, 0 }
   0xe   : > { %p851_p10 = scmp.lt.s32.totalorder %s988_s27, 2  ;;  %p1092_p11 = por %p193_p7, %p37_p0 }
   0xf   : > { %p1096_p12 = por %p199_p8, %p43_p3  ;;  %s237_s15 = sand.u32 1, %s984_s26  }
  0x10   : > { %s1548_s13 = scalar_select %p1092_p11, 1, 0 }
  0x11   : > { %s1549_s14 = scalar_select %p1096_p12, 1, 0 }
  0x12   : > { %s837_s16 = sshll.u32 %s988_s27, 8  ;;  %s792_s17 = sshll.u32 %s237_s15, 4 }
  0x13   : > { %s1105_s20 = scalar_lea.hbm %s1520_s0, %s837_s16  ;;  %s241_s21 = scalar_lea.vmem [#allocation2], %s792_s17 }
  0x14   : > { %s249_s22 = sshll.u32 %s241_s21, 4  ;;  %p1109_p13 = pnand %p851_p10, %p1081_p5  ;;  %s1113_s22 = int_to_ptr.vmem [resolvable:$true] %s249_s22 }
  0x15   : > { %s238_s29 = scalar_lea.sflag [#allocation3], %s237_s15  ;;  %s896_s8 = scalar_lea.hbm %s1105_s20, 256 }
  0x16   : > { %p897_p2 = scmp.ne.s32.totalorder %s1105_s20, %s896_s8  ;;  %p898_p3 = pneg %p1109_p13 }
  0x17   : > { %s901_s11 = scalar_lea.hbm %s1520_s0, 512  ;;  %p902_p5 = scmp.lt.s32.totalorder %s1105_s20, %s1520_s0 }
  0x18   : > { %p899_p4 = pnand %p898_p3, %p897_p2  ;;  %p903_p8 = scmp.lt.s32.totalorder %s901_s11, %s896_s8 }
  0x1a   : > { %p900_p7 = pneg %p899_p4  ;;  %p904_p10 = por %p903_p8, %p902_p5 }
  0x1c   : > { %p905_p9 = pnand %p904_p10, %p900_p7 }
  0x1e   : > { %908 = shalt.err (!%p905_p9)
}
  0x1f   : > { %s909_s15 = scalar_lea.vmem %s1113_s22, 256  ;;  %s990_s19 = smov [#allocation2]  }
  0x20   : > { %p910_p0 = scmp.ne.s32.totalorder %s1113_s22, %s909_s15  ;;  %s914_s21 = sshll.u32 %s990_s19, 4  ;;  %s915_s21 = int_to_ptr.vmem [resolvable:$false] %s914_s21 }
  0x21   : > { %s916_s9 = scalar_lea.vmem %s915_s21, 512  ;;  %p917_p4 = scmp.lt.s32.totalorder %s1113_s22, %s915_s21 }
  0x22   : > { %p912_p1 = pnand %p910_p0, %p898_p3  ;;  %p918_p12 = scmp.lt.s32.totalorder %s916_s9, %s909_s15 }
  0x24   : > { %p913_p2 = pneg %p912_p1  ;;  %p919_p11 = por %p918_p12, %p917_p4 }
  0x26   : > { %p920_p6 = pnand %p919_p11, %p913_p2 }
  0x28   : > { %923 = shalt.err (!%p920_p6)
}
  0x29   : > { %846 = dma.hbm_to_vmem [thread:$0]  (!%p1109_p13), %s1105_s20, 256, %s1113_s22, %s238_s29  }
  0x2a   : > { %p1551_p9 = scmp.lt.s32.totalorder %s988_s27, 3  ;;  %p1552_p7 = scmp.ge.s32.totalorder %s988_s27, 1 }
  0x2c   : > { %p255_p0 = pnand %p1552_p7, %p1551_p9 }
  0x2d   : > { %s1140_s8 = sand.u32 (!%p255_p0), 1, %s980_s25   ;;  %p1553_p6 = scmp.ne.s32.totalorder (!%p255_p0), %s1547_s12, 0 }
  0x2e   : > { %258 = sbr.rel (%p255_p0) target bundleno = 761 (0x2f9), region = 48  ;;  %s1530_s16 = sshll.u32 (!%p255_p0), %s1140_s8, 4 }
  0x2f   : > { %s261_s11 = scalar_lea.sflag (!%p255_p0), [#allocation3], %s1140_s8  ;;  %s264_s23 = scalar_lea.vmem (!%p255_p0), [#allocation2], %s1530_s16 }
  0x33   : > { %967 = dma.done.wait (%p1553_p6), %s261_s11, 256  }
  0x34   : > { %969 = vsyncadd (%p1553_p6), %s261_s11, 4294967040  ;;  %v991_v0 = vmov 0   ;;  %v1151_v1 = vld [vmem:[%s264_s23] sm:$0xff]  ;;  %s992_s20 = smov 112   ;;  %s993_s22 = smov 111   ;;  %v1157_v2 = vld [vmem:[%s264_s23 + $0x8] sm:$0xff]  ;;  %v311_v5 = vlaneseq }
  0x35   : > { %895 = vset.pattern.permute.xlu0 %v991_v0  ;;  %429 = vrot.lane.b32.xlu1 %v1151_v1, %s992_s20  ;;  %s994_s12 = smov 113   ;;  %s995_s29 = smov 127   ;;  %v997_v3 = vmov 0.0   ;;  %v470_v4 = vld [vmem:[%s1524_s4] sm:$0xff]  ;;  %v1574_v61 = vmov 0 }
  0x36   : > { %449 = vrot.lane.b32.xlu0 %v1151_v1, %s993_s22  ;;  %s996_s17 = smov 1   ;;  %544 = vmatprep.mubr.f32.mxu0 %v997_v3  ;;  %s998_s18 = smov 15   ;;  %v1193_v6 = vld [vmem:[%s1521_s1] sm:$0x3]  ;;  %v318_v8 = vshrl.u32 %v311_v5, 7  ;;  %v1212_v12 = vand.u32 127, %v311_v5 }
  0x37   : > { %691 = vmatprep.mubr.f32.mxu1 %v997_v3  ;;  %s1531_s15 = smov 16   ;;  %s1000_s19 = smov 17   ;;  %v1198_v7 = vld [vmem:[%s1522_s2] sm:$0x3]  ;;  %vm304_vm1 = vcmp.le.s32.totalorder %v1193_v6, 14  ;;  %vm299_vm10 = vcmp.ge.s32.totalorder %v1193_v6, 1 }
  0x38   : > { %vm302_vm0 = vcmp.le.s32.totalorder %v1198_v7, 14  ;;  %vm300_vm3 = vcmp.ge.s32.totalorder %v1198_v7, 1  ;;  %v1205_v9 = vsub.s32 1, %v318_v8  ;;  %v1208_v11 = vsub.s32 0, %v318_v8  ;;  %s1586_s21 = smov 16   ;;  %p1609_p12 = scmp.ne.s32.totalorder %s1548_s13, 0 }
  0x39   : > { %431 = vrot.lane.b32.xlu1 %v1157_v2, %s992_s20  ;;  %vm306_vm2 = vmand %vm304_vm1, %vm302_vm0  ;;  %v436_v13 = vsel %vm304_vm1, 1, %v991_v0  ;;  %vm1536_vm5 = vcmp.lt.s32.totalorder %v1212_v12, 111  ;;  %vm1535_vm7 = vcmp.lt.s32.totalorder %v1212_v12, 112  ;;  %v396_v27 = vsel %vm302_vm0, 1, %v991_v0 }
  0x3a   : > { %451 = vrot.lane.b32.xlu0 %v1157_v2, %s993_s22  ;;  %v456_v10 = vsel %vm306_vm2, 1, %v991_v0  ;;  %vm305_vm4 = vmand %vm304_vm1, %vm300_vm3  ;;  %v444_v19 = vrot.slane %v436_v13, %v1205_v9  ;;  %v440_v20 = vrot.slane %v436_v13, %v1208_v11  ;;  %vm1533_vm11 = vcmp.lt.s32.totalorder %v1212_v12, 113 }
  0x3b   : > { %v464_v14 = vrot.slane %v456_v10, %v1205_v9  ;;  %v460_v17 = vrot.slane %v456_v10, %v1208_v11  ;;  %v416_v18 = vsel %vm305_vm4, 1, %v991_v0  ;;  %v404_v34 = vrot.slane %v396_v27, %v1205_v9  ;;  %vm303_vm15 = vmand %vm299_vm10, %vm302_vm0 }
  0x3c   : > { %v424_v22 = vrot.slane %v416_v18, %v1205_v9  ;;  %v420_v26 = vrot.slane %v416_v18, %v1208_v11  ;;  %vm1239_vm9 = vcmp.eq.s32.totalorder %v444_v19, 1  ;;  %vm1247_vm12 = vcmp.eq.s32.totalorder %v440_v20, 1 }
  0x3d   : > { %411 = vrot.lane.b32.xlu1 %v1157_v2, %s994_s12  ;;  %vm1221_vm6 = vcmp.eq.s32.totalorder %v464_v14, 1  ;;  %vm1227_vm8 = vcmp.eq.s32.totalorder %v460_v17, 1  ;;  %v400_v39 = vrot.slane %v396_v27, %v1208_v11  ;;  %v376_v40 = vsel %vm300_vm3, 1, %v991_v0 }
  0x3e   : > { %409 = vrot.lane.b32.xlu0 %v1151_v1, %s994_s12  ;;  %vm1255_vm13 = vcmp.eq.s32.totalorder %v424_v22, 1  ;;  %vm1264_vm14 = vcmp.eq.s32.totalorder %v420_v26, 1  ;;  %vm1534_vm1 = vcmp.lt.s32.totalorder %v1212_v12, 127  ;;  %vm1287_vm2 = vcmp.eq.s32.totalorder %v404_v34, 1 }
  0x3f   : > { %v384_v44 = vrot.slane %v376_v40, %v1205_v9  ;;  %vm1292_vm4 = vcmp.eq.s32.totalorder %v400_v39, 1  ;;  %v380_v48 = vrot.slane %v376_v40, %v1208_v11  ;;  %v356_v49 = vsel %vm303_vm15, 1, %v991_v0 }
  0x40   : > { %vm1537_vm0 = vcmp.lt.s32.totalorder %v1212_v12, 1  ;;  %v364_v53 = vrot.slane %v356_v49, %v1205_v9  ;;  %v360_v57 = vrot.slane %v356_v49, %v1208_v11  ;;  %v336_v58 = vsel %vm299_vm10, 1, %v991_v0 }
  0x41   : > { %391 = vrot.lane.b32.xlu1 %v1157_v2, %s995_s29  ;;  %vm1313_vm15 = vcmp.eq.s32.totalorder %v380_v48, 1  ;;  %v344_v62 = vrot.slane %v336_v58, %v1205_v9  ;;  %v340_v5 = vrot.slane %v336_v58, %v1208_v11  ;;  %v1584_v20 = vmov 0 }
  0x42   : > { %389 = vrot.lane.b32.xlu0 %v1151_v1, %s995_s29 }
  0x45   : > { %371 = vrot.lane.b32.xlu1 %v1157_v2, %s996_s17 }
  0x46   : > { %369 = vrot.lane.b32.xlu0 %v1151_v1, %s996_s17 }
  0x49   : > { %351 = vrot.lane.b32.xlu1 %v1157_v2, %s998_s18 }
  0x4a   : > { %349 = vrot.lane.b32.xlu0 %v1151_v1, %s998_s18 }
  0x4d   : > { %331 = vrot.lane.b32.xlu1 %v1157_v2, %s1531_s15 }
  0x4e   : > { %329 = vrot.lane.b32.xlu0 %v1151_v1, %s1531_s15  ;;  %s705_s15 = scalar_lea.sflag [#allocation4], %s1140_s8 }
  0x51   : > { %309 = vrot.lane.b32.xlu1 %v1157_v2, %s1000_s19 }
  0x52   : > { %307 = vrot.lane.b32.xlu0 %v1151_v1, %s1000_s19 }
  0x56   : > { %473 = vperm.xlu0 %895, %v470_v4   ;;  %v1576_v4 = vmov 0 }
  0xa7   : > { %v430_v15 = vpop.permute.xlu1 %429 }
  0xa8   : > { %v450_v16 = vpop.permute.xlu0 %449 }
  0xab   : > { %v432_v23 = vpop.permute.xlu1 %431 }
  0xac   : > { %v452_v24 = vpop.permute.xlu0 %451  ;;  %v435_v32 = vsel %vm1535_vm7, %v432_v23, %v430_v15  ;;  %v434_v35 = vsel %vm1535_vm7, %v430_v15, %v432_v23  ;;  %vm1538_vm7 = vcmp.lt.s32.totalorder %v1212_v12, 15 }
  0xad   : > { %v455_v28 = vsel %vm1536_vm5, %v452_v24, %v450_v16  ;;  %v454_v29 = vsel %vm1536_vm5, %v450_v16, %v452_v24  ;;  %vm1335_vm5 = vcmp.eq.s32.totalorder %v364_v53, 1  ;;  %v469_v24 = vld [vmem:[%s1523_s3] sm:$0xff] }
  0xae   : > { %798 = vmatprep.subr.msk.mxu0 %vm1221_vm6, %v455_v28  ;;  %v1575_v61 = vsel %vm1335_vm5, 4294967295, %v1574_v61 }
  0xaf   : > { %799 = vmatpush1.msk.msra.mxu0 %vm1227_vm8, %v454_v29  ;;  %v412_v36 = vpop.permute.xlu1 %411 }
  0xb0   : > { %800 = vmatprep.subr.msk.mxu0 %vm1239_vm9, %v435_v32  ;;  %v410_v37 = vpop.permute.xlu0 %409 }
  0xb1   : > { %v414_v41 = vsel %vm1533_vm11, %v410_v37, %v412_v36  ;;  %v415_v42 = vsel %vm1533_vm11, %v412_v36, %v410_v37  ;;  %801 = vmatpush1.msk.msra.mxu0 %vm1247_vm12, %v434_v35  ;;  %vm1307_vm11 = vcmp.eq.s32.totalorder %v384_v44, 1  ;;  %v618_v36 = vld [vmem:[%s1526_s6] sm:$0xff] }
  0xb2   : > { %802 = vmatprep.subr.msk.mxu0 %vm1255_vm13, %v415_v42 }
  0xb3   : > { %803 = vmatpush1.msk.msra.mxu0 %vm1264_vm14, %v414_v41  ;;  %v392_v45 = vpop.permute.xlu1 %391 }
  0xb4   : > { %v390_v46 = vpop.permute.xlu0 %389 }
  0xb5   : > { %v394_v50 = vsel %vm1534_vm1, %v390_v46, %v392_v45  ;;  %v395_v51 = vsel %vm1534_vm1, %v392_v45, %v390_v46  ;;  %vm301_vm1 = vmand %vm299_vm10, %vm300_vm3  ;;  %vm1541_vm3 = vcmp.lt.s32.totalorder %v1212_v12, 16  ;;  %vm1355_vm10 = vcmp.eq.s32.totalorder %v344_v62, 1 }
  0xb6   : > { %804 = vmatprep.subr.msk.mxu0 %vm1287_vm2, %v395_v51  ;;  %v316_v6 = vsel %vm301_vm1, 1, %v991_v0  ;;  %vm1360_vm1 = vcmp.eq.s32.totalorder %v340_v5, 1 }
  0xb7   : > { %805 = vmatpush1.msk.msra.mxu0 %vm1292_vm4, %v394_v50  ;;  %v372_v54 = vpop.permute.xlu1 %371  ;;  %v324_v0 = vrot.slane %v316_v6, %v1205_v9  ;;  %v320_v16 = vrot.slane %v316_v6, %v1208_v11  ;;  %v1582_v9 = vmov 0 }
  0xb8   : > { %502 = vmatprep.subr.mxu0 %v1157_v2  ;;  %v370_v55 = vpop.permute.xlu0 %369 }
  0xb9   : > { %v374_v59 = vsel %vm1537_vm0, %v370_v55, %v372_v54  ;;  %v375_v60 = vsel %vm1537_vm0, %v372_v54, %v370_v55  ;;  %503 = vmatpush1.msra.mxu0 %v1151_v1  ;;  %vm1340_vm0 = vcmp.eq.s32.totalorder %v360_v57, 1 }
  0xba   : > { %806 = vmatprep.subr.msk.mxu0 %vm1307_vm11, %v374_v59  ;;  %v1577_v4 = vsel %vm1340_vm0, 4294967295, %v1576_v4 }
  0xbb   : > { %807 = vmatpush1.msk.msra.mxu0 %vm1313_vm15, %v375_v60  ;;  %v352_v63 = vpop.permute.xlu1 %351 }
  0xbc   : > { %v350_v3 = vpop.permute.xlu0 %349 }
  0xbd   : > { %v354_v7 = vsel %vm1538_vm7, %v350_v3, %v352_v63  ;;  %v355_v8 = vsel %vm1538_vm7, %v352_v63, %v350_v3  ;;  %vm1543_vm7 = vcmp.lt.s32.totalorder %v1212_v12, 17  ;;  %v617_v3 = vld [vmem:[%s1525_s5] sm:$0xff] }
  0xbe   : > { %808 = vmatprep.subr.msk.mxu0 %vm1335_vm5, %v354_v7  ;;  %vm1378_vm5 = vcmp.eq.s32.totalorder %v320_v16, 1 }
  0xbf   : > { %809 = vmatpush1.msk.msra.mxu0 %vm1340_vm0, %v355_v8  ;;  %v332_v13 = vpop.permute.xlu1 %331  ;;  %vm1374_vm0 = vcmp.eq.s32.totalorder %v324_v0, 1  ;;  %v1585_v20 = vsel %vm1378_vm5, 4294967295, %v1584_v20 }
  0xc0   : > { %v330_v14 = vpop.permute.xlu0 %329  ;;  %v1583_v9 = vsel %vm1374_vm0, 4294967295, %v1582_v9 }
  0xc1   : > { %v334_v17 = vsel %vm1541_vm3, %v330_v14, %v332_v13  ;;  %v335_v18 = vsel %vm1541_vm3, %v332_v13, %v330_v14  ;;  %vm1542_vm3 = vcmask 588800  }
  0xc2   : > { %810 = vmatprep.subr.msk.mxu0 %vm1355_vm10, %v334_v17 }
  0xc3   : > { %811 = vmatpush1.msk.msra.mxu0 %vm1360_vm1, %v335_v18  ;;  %v310_v19 = vpop.permute.xlu1 %309 }
  0xc4   : > { %v308_v11 = vpop.permute.xlu0 %307 }
  0xc5   : > { %v314_v22 = vsel %vm1543_vm7, %v308_v11, %v310_v19  ;;  %v315_v23 = vsel %vm1543_vm7, %v310_v19, %v308_v11 }
  0xc6   : > { %812 = vmatprep.subr.msk.mxu0 %vm1374_vm0, %v314_v22 }
  0xc7   : > { %813 = vmatpush1.msk.msra.mxu0 %vm1378_vm5, %v315_v23  ;;  %vm1589_vm5 = vcmp.lt.s32.totalorder %v1212_v12, 112 }
  0xc8   : > { %814 = vmatmul.mubr.msk.f32.vlgmr.msra.gmra.mxu0 %vm1542_vm3, %v469_v24  ;;  %vm1587_vm3 = vcmp.lt.s32.totalorder %v1212_v12, 111  ;;  %vm1590_vm0 = vmmov %vm1589_vm5 }
  0xc9   : > { %vm1588_vm7 = vmmov %vm1587_vm3 }
  0xd1   : > { %v474_v26 = vpop.permute.xlu0 %473 }
 0x188   : > { %v546_v27 = vpop.f32.mrf.mxu0 }
 0x189   : > { %v547_v28 = vadd.f32 %v546_v27, %v474_v26 }
 0x18a   : > { %v548_v29 = vpop.f32.mrf.mxu0 }
 0x18b   : > { %v551_v32 = vmax.f32 %v547_v28, 0.0  ;;  %v549_v34 = vadd.f32 %v548_v29, %v474_v26 }
 0x18d   : > { %601 = vrot.lane.b32.xlu0 %v551_v32, %s992_s20  ;;  %609 = vrot.lane.b32.xlu1 %v551_v32, %s993_s22  ;;  %v552_v35 = vmax.f32 %v549_v34, 0.0 }
 0x191   : > { %593 = vrot.lane.b32.xlu0 %v551_v32, %s994_s12  ;;  %611 = vrot.lane.b32.xlu1 %v552_v35, %s993_s22 }
 0x195   : > { %585 = vrot.lane.b32.xlu0 %v551_v32, %s995_s29  ;;  %603 = vrot.lane.b32.xlu1 %v552_v35, %s992_s20 }
 0x199   : > { %577 = vrot.lane.b32.xlu0 %v551_v32, %s996_s17  ;;  %595 = vrot.lane.b32.xlu1 %v552_v35, %s994_s12 }
 0x19d   : > { %569 = vrot.lane.b32.xlu0 %v551_v32, %s998_s18  ;;  %587 = vrot.lane.b32.xlu1 %v552_v35, %s995_s29  ;;  %s838_s29 = sshll.u32 %s1063_s28, 8  ;;  %s1001_s28 = smov [#allocation5]  }
 0x19e   : > { %s717_s16 = scalar_lea.hbm %s1527_s7, %s838_s29  ;;  %s928_s22 = sshll.u32 %s1001_s28, 4  ;;  %s929_s22 = int_to_ptr.vmem [resolvable:$false] %s928_s22 }
 0x19f   : > { %s930_s9 = scalar_lea.vmem %s929_s22, 512 }
 0x1a1   : > { %561 = vrot.lane.b32.xlu0 %v551_v32, %s1586_s21  ;;  %579 = vrot.lane.b32.xlu1 %v552_v35, %s996_s17  ;;  %s1608_s17 = sshll.u32 %s1140_s8, 4 }
 0x1a5   : > { %553 = vrot.lane.b32.xlu0 %v551_v32, %s1000_s19  ;;  %571 = vrot.lane.b32.xlu1 %v552_v35, %s998_s18  ;;  %s294_s18 = scalar_lea.vmem [#allocation5], %s1608_s17 }
 0x1a9   : > { %621 = vperm.xlu0 %895, %v618_v36   ;;  %563 = vrot.lane.b32.xlu1 %v552_v35, %s1586_s21 }
 0x1ad   : > { %555 = vrot.lane.b32.xlu1 %v552_v35, %s1000_s19  ;;  %s719_s19 = sshll.u32 %s294_s18, 4  ;;  %s720_s19 = int_to_ptr.vmem [resolvable:$true] %s719_s19 }
 0x1ae   : > { %s924_s21 = scalar_lea.vmem %s720_s19, 256  ;;  %p931_p3 = scmp.lt.s32.totalorder %s720_s19, %s929_s22 }
 0x1af   : > { %p925_p11 = scmp.ne.s32.totalorder %s720_s19, %s924_s21  ;;  %p932_p5 = scmp.lt.s32.totalorder %s930_s9, %s924_s21 }
 0x1b1   : > { %p926_p13 = pnand %p925_p11, %p1609_p12  ;;  %p933_p8 = por %p932_p5, %p931_p3 }
 0x1b3   : > { %p927_p1 = pneg %p926_p13 }
 0x1b5   : > { %p934_p10 = pnand %p933_p8, %p927_p1 }
 0x1ff   : > { %v602_v37 = vpop.permute.xlu0 %601  ;;  %v610_v39 = vpop.permute.xlu1 %609 }
 0x203   : > { %v594_v40 = vpop.permute.xlu0 %593  ;;  %v612_v41 = vpop.permute.xlu1 %611 }
 0x204   : > { %v614_v42 = vsel %vm1587_vm3, %v612_v41, %v610_v39  ;;  %v613_v44 = vsel %vm1588_vm7, %v610_v39, %v612_v41 }
 0x205   : > { %815 = vmatprep.subr.msk.mxu1 %vm1221_vm6, %v614_v42  ;;  %vm1591_vm6 = vcmp.lt.s32.totalorder %v1212_v12, 113 }
 0x206   : > { %816 = vmatpush1.msk.msra.mxu1 %vm1227_vm8, %v613_v44  ;;  %vm1592_vm7 = vmmov %vm1591_vm6 }
 0x207   : > { %v586_v45 = vpop.permute.xlu0 %585  ;;  %v604_v46 = vpop.permute.xlu1 %603 }
 0x208   : > { %v605_v48 = vsel %vm1589_vm5, %v602_v37, %v604_v46  ;;  %v606_v49 = vsel %vm1590_vm0, %v604_v46, %v602_v37  ;;  %vm1593_vm5 = vcmp.lt.s32.totalorder %v1212_v12, 127 }
 0x209   : > { %817 = vmatprep.subr.msk.mxu1 %vm1239_vm9, %v606_v49  ;;  %vm1594_vm8 = vmmov %vm1593_vm5  ;;  %vm1595_vm9 = vcmp.lt.s32.totalorder %v1212_v12, 1 }
 0x20a   : > { %818 = vmatpush1.msk.msra.mxu1 %vm1247_vm12, %v605_v48  ;;  %vm1596_vm12 = vmmov %vm1595_vm9 }
 0x20b   : > { %v596_v50 = vpop.permute.xlu1 %595  ;;  %v578_v51 = vpop.permute.xlu0 %577 }
 0x20c   : > { %v597_v21 = vsel %vm1591_vm6, %v594_v40, %v596_v50  ;;  %v598_v25 = vsel %vm1592_vm7, %v596_v50, %v594_v40  ;;  %vm1605_vm6 = vnez %v1583_v9 }
 0x20d   : > { %819 = vmatprep.subr.msk.mxu1 %vm1255_vm13, %v598_v25  ;;  %vm1597_vm13 = vcmp.lt.s32.totalorder %v1212_v12, 15 }
 0x20e   : > { %820 = vmatpush1.msk.msra.mxu1 %vm1264_vm14, %v597_v21  ;;  %vm1598_vm14 = vmmov %vm1597_vm13 }
 0x20f   : > { %v588_v53 = vpop.permute.xlu1 %587  ;;  %v570_v54 = vpop.permute.xlu0 %569 }
 0x210   : > { %v589_v30 = vsel %vm1593_vm5, %v586_v45, %v588_v53  ;;  %v590_v31 = vsel %vm1594_vm8, %v588_v53, %v586_v45 }
 0x211   : > { %821 = vmatprep.subr.msk.mxu1 %vm1287_vm2, %v590_v31  ;;  %vm1599_vm2 = vnez %v1575_v61 }
 0x212   : > { %822 = vmatpush1.msk.msra.mxu1 %vm1292_vm4, %v589_v30  ;;  %vm1600_vm4 = vnez %v1577_v4 }
 0x213   : > { %649 = vmatprep.subr.mxu1 %v552_v35  ;;  %v580_v33 = vpop.permute.xlu1 %579  ;;  %v562_v58 = vpop.permute.xlu0 %561 }
 0x214   : > { %v581_v38 = vsel %vm1595_vm9, %v578_v51, %v580_v33  ;;  %v582_v55 = vsel %vm1596_vm12, %v580_v33, %v578_v51  ;;  %650 = vmatpush1.msra.mxu1 %v551_v32 }
 0x215   : > { %823 = vmatprep.subr.msk.mxu1 %vm1307_vm11, %v581_v38  ;;  %vm1601_vm11 = vcmp.lt.s32.totalorder %v1212_v12, 16 }
 0x216   : > { %824 = vmatpush1.msk.msra.mxu1 %vm1313_vm15, %v582_v55  ;;  %vm1602_vm0 = vmmov %vm1601_vm11  ;;  %vm1603_vm15 = vcmp.lt.s32.totalorder %v1212_v12, 17 }
 0x217   : > { %v572_v43 = vpop.permute.xlu1 %571  ;;  %v554_v60 = vpop.permute.xlu0 %553  ;;  %vm1604_vm3 = vmmov %vm1603_vm15 }
 0x218   : > { %v573_v47 = vsel %vm1597_vm13, %v570_v54, %v572_v43  ;;  %v574_v57 = vsel %vm1598_vm14, %v572_v43, %v570_v54 }
 0x219   : > { %825 = vmatprep.subr.msk.mxu1 %vm1599_vm2, %v573_v47 }
 0x21a   : > { %826 = vmatpush1.msk.msra.mxu1 %vm1600_vm4, %v574_v57 }
 0x21b   : > { %v564_v59 = vpop.permute.xlu1 %563 }
 0x21c   : > { %v565_v52 = vsel %vm1601_vm11, %v562_v58, %v564_v59  ;;  %v566_v56 = vsel %vm1602_vm0, %v564_v59, %v562_v58 }
 0x21d   : > { %827 = vmatprep.subr.msk.mxu1 %vm1355_vm10, %v565_v52  ;;  %vm1606_vm10 = vnez %v1585_v20 }
 0x21e   : > { %828 = vmatpush1.msk.msra.mxu1 %vm1360_vm1, %v566_v56  ;;  %vm1607_vm1 = vcmask 588800  }
 0x21f   : > { %v556_v61 = vpop.permute.xlu1 %555 }
 0x220   : > { %v557_v62 = vsel %vm1603_vm15, %v554_v60, %v556_v61  ;;  %v558_v63 = vsel %vm1604_vm3, %v556_v61, %v554_v60 }
 0x221   : > { %829 = vmatprep.subr.msk.mxu1 %vm1605_vm6, %v557_v62 }
 0x222   : > { %830 = vmatpush1.msk.msra.mxu1 %vm1606_vm10, %v558_v63 }
 0x223   : > { %831 = vmatmul.mubr.msk.f32.vlgmr.msra.gmra.mxu1 %vm1607_vm1, %v617_v3 }
 0x224   : > { %v622_v4 = vpop.permute.xlu0 %621 }
 0x2e3   : > { %v693_v5 = vpop.f32.mrf.mxu1 }
 0x2e4   : > { %v694_v6 = vadd.f32 %v693_v5, %v622_v4 }
 0x2e5   : > { %v695_v7 = vpop.f32.mrf.mxu1 }
 0x2e6   : > { %v698_v12 = vadd.f32 %v694_v6, %v1151_v1  ;;  %v696_v8 = vadd.f32 %v695_v7, %v622_v4 }
 0x2e8   : > { %v700_v10 = vmax.f32 %v698_v12, 0.0  ;;  %v699_v0 = vadd.f32 %v696_v8, %v1157_v2 }
 0x2ea   : > { %702 = vst [vmem:[%s294_s18] sm:$0xff] %v700_v10  ;;  %v701_v13 = vmax.f32 %v699_v0, 0.0 }
 0x2ec   : > { %703 = vst [vmem:[%s294_s18 + $0x8] sm:$0xff] %v701_v13 }
 0x2ed   : > { %937 = shalt.err (!%p934_p10)
}
 0x2ee   : > { %s938_s20 = scalar_lea.hbm %s717_s16, 256  ;;  %s942_s29 = scalar_lea.hbm %s1527_s7, 512 }
 0x2ef   : > { %p939_p2 = scmp.ne.s32.totalorder %s717_s16, %s938_s20  ;;  %p943_p7 = scmp.lt.s32.totalorder %s717_s16, %s1527_s7 }
 0x2f0   : > { %p944_p0 = scmp.lt.s32.totalorder %s942_s29, %s938_s20 }
 0x2f1   : > { %p940_p4 = pnand %p939_p2, %p1609_p12 }
 0x2f2   : > { %p945_p6 = por %p944_p0, %p943_p7 }
 0x2f3   : > { %p941_p9 = pneg %p940_p4 }
 0x2f5   : > { %p946_p11 = pnand %p945_p6, %p941_p9 }
 0x2f7   : > { %949 = shalt.err (!%p946_p11)
}
 0x2f8   : > { %841 = dma.vmem_to_hbm [thread:$0]  (%p1609_p12), %s720_s19, 256, %s717_s16, %s705_s15  }
 0x2f9 PF: > { %s731_s11 = sand.u32 1, %s976_s24   ;;  %p1610_p13 = scmp.ne.s32.totalorder %s1549_s14, 0 }
 0x2fa   : > { %p1611_p1 = scmp.ge.s32.totalorder %s988_s27, 2  ;;  %s732_s23 = scalar_lea.sflag [#allocation4], %s731_s11 }
 0x2fc   : > { %p848_p3 = pnand %p1611_p1, %p1610_p13 }
 0x2fe   : > { %p849_p5 = pneg %p848_p3 }
 0x300   : > { %971 = dma.done.wait (%p849_p5), %s732_s23, 256  }
 0x301   : > { %973 = vsyncadd (%p849_p5), %s732_s23, 4294967040  ;;  %p20_p8 = scmp.ge.s32.totalorder %s1067_s30, 4   ;;  %s1612_s24 = smov %s980_s25 }
 0x302   : > { %s1613_s25 = smov %s984_s26  ;;  %s1614_s26 = smov %s1079_s10 }
 0x303   : > { %s1615_s27 = smov %s1067_s30  ;;  %22 = sbr.rel (!%p20_p8) target bundleno = 5 (0x5), region = 93 }
 0x308   :  { %737 = vsyncpa [#allocation3], 1 }
 0x309   :  { %739 = vsyncpa [#allocation3 + $0x1], 1 }
 0x30a   :  { %740 = vsyncpa [#allocation4], 1 }
 0x30b   :  { %742 = vsyncpa [#allocation4 + $0x1], 1 }

</bundles_post_ra>
